<compile_context>
chip_gen: v6e
topology: v6e:2x2x1
jax: 0.10.0
libtpu: 0.0.40
codegen_flags: <defaults>
</compile_context>

<pallas_src>
import functools

import jax
import jax.numpy as jnp
from jax.experimental import pallas as pl
from jax.experimental.pallas import tpu as pltpu


def _round_up(x, m):
    return ((x + m - 1) // m) * m


def _pad_to(m, rows, cols):
    return jnp.pad(m, ((0, rows - m.shape[0]), (0, cols - m.shape[1])))


# ----------------------------------------------------------------------------
# Host-side parameter packing (done ONCE at init, not per call).
#
# Param slab layout (sublane-stacked, all segments padded to width
# W = max(hidden, 2*latent, d_out) and to a multiple of 8 rows):
#   rows [off_w1  : +d_in  )  w1      (d_in,   hidden)
#   rows [off_wml : +hidden)  [wmu|wlv](hidden, 2*latent)
#   rows [off_wz  : +latent)  wz      (latent, hidden)
#   rows [off_wc  : +cond  )  wc      (cond,   hidden)
#   rows [off_wo  : +hidden)  wo      (hidden, d_out)
#   rows [off_b   : +8     )  row0=b1, row1=[bmu|blv], row2=bh, row3=bo
# ----------------------------------------------------------------------------
def build_param_slab(enc, dec):
    d_in, hidden = enc["w1"].shape
    latent = enc["wmu"].shape[1]
    cond = dec["wc"].shape[0]
    d_out = dec["wo"].shape[1]
    W = max(hidden, 2 * latent, d_out)

    w_ml = jnp.concatenate([enc["wmu"], enc["wlv"]], axis=1)
    b_ml = jnp.concatenate([enc["bmu"], enc["blv"]], axis=1)

    segs = []
    offs = {}
    row = 0

    def add(name, mat):
        nonlocal row
        r = _round_up(mat.shape[0], 8)
        offs[name] = row
        segs.append(_pad_to(mat.astype(jnp.float32), r, W))
        row += r

    add("w1", enc["w1"])
    add("w_ml", w_ml)
    add("w_z", dec["wz"])
    add("w_c", dec["wc"])
    add("w_o", dec["wo"])

    bias = jnp.zeros((8, W), jnp.float32)
    bias = bias.at[0, :hidden].set(enc["b1"][0])
    bias = bias.at[1, :2 * latent].set(b_ml[0])
    bias = bias.at[2, :hidden].set(dec["bh"][0])
    bias = bias.at[3, :d_out].set(dec["bo"][0])
    offs["b"] = row
    segs.append(bias)
    row += 8

    slab = jnp.concatenate(segs, axis=0)
    dims = (d_in, hidden, latent, cond, d_out)
    return slab, dims, offs


# ----------------------------------------------------------------------------
# Fused VAE forward kernel (single pallas_call):
#   h      = tanh(x @ W1 + b1)
#   [mu|lv]= h @ [Wmu|Wlv] + [bmu|blv]               (one fused matmul)
#   z      = mu + exp(0.5*lv) * eps
#   hd     = tanh(z @ Wz + cond @ Wc + bh)           (no lane concat)
#   dec    = (hd @ Wo + bo) / temperature
#   out    = [mu | lv | z | dec | 0-pad]             (lane-dense, width 128k)
# ----------------------------------------------------------------------------
def _fused_vae_kernel(act_ref, p_ref, out_ref, *, dims, offs, temperature):
    d_in, hidden, latent, cond, d_out = dims
    o = offs

    a = act_ref[...]
    x = a[:, :d_in]
    c = a[:, d_in:d_in + cond]
    eps = a[:, d_in + cond:d_in + cond + latent]

    # Static, 8-aligned sublane slices of the param slab (free address views).
    w1 = p_ref[o["w1"]:o["w1"] + d_in, :hidden]
    w_ml = p_ref[o["w_ml"]:o["w_ml"] + hidden, :2 * latent]
    w_z = p_ref[o["w_z"]:o["w_z"] + latent, :hidden]
    w_c = p_ref[o["w_c"]:o["w_c"] + cond, :hidden]
    w_o = p_ref[o["w_o"]:o["w_o"] + hidden, :d_out]
    b = p_ref[o["b"]:o["b"] + 4, :]
    b1 = b[0:1, :hidden]
    b_ml = b[1:2, :2 * latent]
    b_h = b[2:3, :hidden]
    b_o = b[3:4, :d_out]

    # ---- encoder ----
    h = jnp.tanh(jnp.dot(x, w1, preferred_element_type=jnp.float32) + b1)
    ml = jnp.dot(h, w_ml, preferred_element_type=jnp.float32) + b_ml
    mu = ml[:, :latent]
    logvar = ml[:, latent:2 * latent]
    z = mu + jnp.exp(0.5 * logvar) * eps

    # ---- decoder (two MXU pushes instead of a lane concat) ----
    hd = jnp.tanh(
        jnp.dot(z, w_z, preferred_element_type=jnp.float32)
        + jnp.dot(c, w_c, preferred_element_type=jnp.float32)
        + b_h)
    dec = jnp.dot(hd, w_o, preferred_element_type=jnp.float32) + b_o
    if temperature != 1.0:  # static Python check; exact division matches ref
        dec = dec / temperature

    # ---- lane-dense packed output: [mu | logvar | z | decoded | 0-pad] ----
    pieces = [ml, z, dec]  # ml already holds [mu | logvar] contiguously
    pad = out_ref.shape[1] - (3 * latent + d_out)
    if pad > 0:
        pieces.append(jnp.zeros((out_ref.shape[0], pad), jnp.float32))
    out_ref[...] = jnp.concatenate(pieces, axis=-1)


# ----------------------------------------------------------------------------
# Encoder-only kernel (for VAE.encode): out = [mu | logvar | z | 0-pad]
# Reuses the same param slab (only the encoder segments are touched).
# ----------------------------------------------------------------------------
def _encoder_kernel(act_ref, p_ref, out_ref, *, dims, offs):
    d_in, hidden, latent, cond, d_out = dims
    o = offs

    a = act_ref[...]
    x = a[:, :d_in]
    eps = a[:, d_in:d_in + latent]

    w1 = p_ref[o["w1"]:o["w1"] + d_in, :hidden]
    w_ml = p_ref[o["w_ml"]:o["w_ml"] + hidden, :2 * latent]
    b = p_ref[o["b"]:o["b"] + 4, :]
    b1 = b[0:1, :hidden]
    b_ml = b[1:2, :2 * latent]

    h = jnp.tanh(jnp.dot(x, w1, preferred_element_type=jnp.float32) + b1)
    ml = jnp.dot(h, w_ml, preferred_element_type=jnp.float32) + b_ml
    mu = ml[:, :latent]
    logvar = ml[:, latent:2 * latent]
    z = mu + jnp.exp(0.5 * logvar) * eps

    pieces = [ml, z]
    pad = out_ref.shape[1] - 3 * latent
    if pad > 0:
        pieces.append(jnp.zeros((out_ref.shape[0], pad), jnp.float32))
    out_ref[...] = jnp.concatenate(pieces, axis=-1)


# ----------------------------------------------------------------------------
# Wrappers
# ----------------------------------------------------------------------------
def _batch_tiles(B):
    tb = min(_round_up(B, 8), 256)
    b_pad = _round_up(B, tb)
    return tb, b_pad


def vae_forward_fused(x, condition, eps, param_slab, dims, offs,
                      temperature=1.0):
    B = x.shape[0]
    d_in, hidden, latent, cond, d_out = dims
    act_w = _round_up(d_in + cond + latent, 128)
    out_w = _round_up(3 * latent + d_out, 128)
    tb, b_pad = _batch_tiles(B)

    # One lane-dense activation slab: [x | cond | eps | 0-pad].
    act = jnp.concatenate([x, condition, eps], axis=-1).astype(jnp.float32)
    act = jnp.pad(act, ((0, b_pad - B), (0, act_w - act.shape[1])))

    kernel = functools.partial(_fused_vae_kernel, dims=dims, offs=offs,
                               temperature=float(temperature))

    n_mac = (d_in * hidden + hidden * 2 * latent
             + (latent + cond) * hidden + hidden * d_out)
    cost = pl.CostEstimate(
        flops=2 * b_pad * n_mac,
        transcendentals=b_pad * (2 * hidden + latent),
        bytes_accessed=4 * (act.size + param_slab.size + b_pad * out_w))

    packed = pl.pallas_call(
        kernel,
        out_shape=jax.ShapeDtypeStruct((b_pad, out_w), jnp.float32),
        grid=(b_pad // tb,),
        in_specs=[pl.BlockSpec((tb, act_w), lambda i: (i, 0)),
                  pl.BlockSpec(param_slab.shape, lambda i: (0, 0))],
        out_specs=pl.BlockSpec((tb, out_w), lambda i: (i, 0)),
        compiler_params=pltpu.CompilerParams(
            dimension_semantics=("parallel",)),
        cost_estimate=cost,
    )(act, param_slab)

    mu = packed[:B, :latent]
    logvar = packed[:B, latent:2 * latent]
    z = packed[:B, 2 * latent:3 * latent]
    decoded = packed[:B, 3 * latent:3 * latent + d_out]
    return mu, logvar, z, decoded


def encoder_forward(x, eps, param_slab, dims, offs):
    B = x.shape[0]
    d_in, hidden, latent, cond, d_out = dims
    act_w = _round_up(d_in + latent, 128)
    out_w = _round_up(3 * latent, 128)
    tb, b_pad = _batch_tiles(B)

    act = jnp.concatenate([x, eps], axis=-1).astype(jnp.float32)
    act = jnp.pad(act, ((0, b_pad - B), (0, act_w - act.shape[1])))

    kernel = functools.partial(_encoder_kernel, dims=dims, offs=offs)

    cost = pl.CostEstimate(
        flops=2 * b_pad * (d_in * hidden + hidden * 2 * latent),
        transcendentals=b_pad * (hidden + latent),
        bytes_accessed=4 * (act.size + param_slab.size + b_pad * out_w))

    packed = pl.pallas_call(
        kernel,
        out_shape=jax.ShapeDtypeStruct((b_pad, out_w), jnp.float32),
        grid=(b_pad // tb,),
        in_specs=[pl.BlockSpec((tb, act_w), lambda i: (i, 0)),
                  pl.BlockSpec(param_slab.shape, lambda i: (0, 0))],
        out_specs=pl.BlockSpec((tb, out_w), lambda i: (i, 0)),
        compiler_params=pltpu.CompilerParams(
            dimension_semantics=("parallel",)),
        cost_estimate=cost,
    )(act, param_slab)

    return packed[:B, :latent], packed[:B, latent:2 * latent], \
        packed[:B, 2 * latent:3 * latent]


class VAE:
    """JAX/Pallas port of model/cvae_old.VAE (wrapper semantics preserved)."""

    def __init__(self, enc_params, dec_params, n_steps=None):
        # Pre-pack ALL parameters into one slab, once, on the host.
        self.param_slab, self.dims, self.offs = build_param_slab(enc_params,
                                                                 dec_params)
        # Registered buffers of the torch module (unused in forward()).
        self.steps_seen = jnp.array(0, dtype=jnp.int32)
        self.kld_max = jnp.array(1.0, dtype=jnp.float32)
        self.kld_weight = jnp.array(0.0, dtype=jnp.float32)
        if n_steps is not None:
            self.kld_inc = (self.kld_max - self.kld_weight) / (n_steps // 2)
        else:
            self.kld_inc = jnp.array(0.0, dtype=jnp.float32)

    def encode(self, batch_data, eps):
        return encoder_forward(batch_data, eps, self.param_slab, self.dims,
                               self.offs)

    def forward(self, batch_data, batch_length, targets, condition, device,
                temperature=1.0, *, eps):
        # `targets` / `batch_length` / `device` accepted for API parity with
        # the torch module; unused by the concrete conditional-MLP decoder.
        del batch_length, targets, device
        return vae_forward_fused(batch_data, condition, eps,
                                 self.param_slab, self.dims, self.offs,
                                 temperature=temperature)


def _init_params(key, d_in, hidden, latent, cond, d_out):
    ks = jax.random.split(key, 8)
    s = 0.1
    enc = {
        "w1": s * jax.random.normal(ks[0], (d_in, hidden), jnp.float32),
        "b1": jnp.zeros((1, hidden), jnp.float32),
        "wmu": s * jax.random.normal(ks[1], (hidden, latent), jnp.float32),
        "bmu": jnp.zeros((1, latent), jnp.float32),
        "wlv": s * jax.random.normal(ks[2], (hidden, latent), jnp.float32),
        "blv": jnp.zeros((1, latent), jnp.float32),
    }
    dec = {
        "wz": s * jax.random.normal(ks[3], (latent, hidden), jnp.float32),
        "wc": s * jax.random.normal(ks[4], (cond, hidden), jnp.float32),
        "bh": jnp.zeros((1, hidden), jnp.float32),
        "wo": s * jax.random.normal(ks[5], (hidden, d_out), jnp.float32),
        "bo": jnp.zeros((1, d_out), jnp.float32),
    }
    return enc, dec


if __name__ == "__main__":
    key = jax.random.PRNGKey(0)
    B, D_IN, HIDDEN, LATENT, COND, D_OUT = 8, 32, 32, 16, 8, 32

    k_p, k_x, k_c, k_eps, k_t = jax.random.split(key, 5)
    enc_params, dec_params = _init_params(k_p, D_IN, HIDDEN, LATENT, COND,
                                          D_OUT)

    batch_data = jax.random.normal(k_x, (B, D_IN), jnp.float32)
    condition = jax.random.normal(k_c, (B, COND), jnp.float32)
    eps = jax.random.normal(k_eps, (B, LATENT), jnp.float32)
    targets = jax.random.normal(k_t, (B, D_OUT), jnp.float32)
    batch_length = jnp.full((B,), D_IN, jnp.int32)

    model = VAE(enc_params, dec_params, n_steps=100)

    # Forward at temperature 1.0 and at temperature 0.7 (exercise both paths).
    mu, logvar, z, decoded = model.forward(
        batch_data, batch_length, targets, condition, device=None,
        temperature=1.0, eps=eps)
    mu_t, lv_t, z_t, decoded_t = model.forward(
        batch_data, batch_length, targets, condition, device=None,
        temperature=0.7, eps=eps)
    jax.block_until_ready((mu, logvar, z, decoded, decoded_t))

    # Encoder-only path (VAE.encode).
    mu_e, lv_e, z_e = model.encode(batch_data, eps)
    jax.block_until_ready((mu_e, lv_e, z_e))

    # Cross-check against a plain-JAX reference of the original (unfused) math.
    h = jnp.tanh(batch_data @ enc_params["w1"] + enc_params["b1"])
    mu_ref = h @ enc_params["wmu"] + enc_params["bmu"]
    lv_ref = h @ enc_params["wlv"] + enc_params["blv"]
    z_ref = mu_ref + jnp.exp(0.5 * lv_ref) * eps
    hd = jnp.tanh(z_ref @ dec_params["wz"] + condition @ dec_params["wc"]
                  + dec_params["bh"])
    dec_pre = hd @ dec_params["wo"] + dec_params["bo"]
    dec_ref = dec_pre / 1.0
    dec_ref_t = dec_pre / 0.7

    assert jnp.allclose(mu, mu_ref, atol=2e-5)
    assert jnp.allclose(logvar, lv_ref, atol=2e-5)
    assert jnp.allclose(z, z_ref, atol=2e-5)
    assert jnp.allclose(decoded, dec_ref, atol=2e-5)
    assert jnp.allclose(mu_t, mu_ref, atol=2e-5)
    assert jnp.allclose(decoded_t, dec_ref_t, atol=2e-5)
    assert jnp.allclose(mu_e, mu_ref, atol=2e-5)
    assert jnp.allclose(lv_e, lv_ref, atol=2e-5)
    assert jnp.allclose(z_e, z_ref, atol=2e-5)

    print("KERNEL_OK")
</pallas_src>

<mosaic_0001>
module attributes {stable_mosaic.version = 11 : i64} {
  func.func @_fused_vae_kernel(%arg0: i32, %arg1: memref<8x128xf32, #tpu.memory_space<vmem>>, %arg2: memref<128x32xf32, #tpu.memory_space<vmem>>, %arg3: memref<8x128xf32, #tpu.memory_space<vmem>>) attributes {dimension_semantics = [#tpu.dimension_semantics<parallel>], iteration_bounds = array<i64: 1>, scalar_prefetch = 0 : i64, scratch_operands = 0 : i64, tpu.core_type = #tpu.core_type<tc>, window_params = [{transform_indices = @transform_0, window_bounds = array<i64: 8, 128>}, {pipeline_mode = #tpu.pipeline_mode<synchronous>, transform_indices = @transform_1, window_bounds = array<i64: 128, 32>}, {transform_indices = @transform_2, window_bounds = array<i64: 8, 128>}]} {
    %c0 = arith.constant 0 : index
    %c0_0 = arith.constant 0 : index
    %0 = vector.load %arg1[%c0, %c0_0] : memref<8x128xf32, #tpu.memory_space<vmem>>, vector<8x128xf32>
    %1 = vector.extract_strided_slice %0 {offsets = [0, 0], sizes = [8, 32], strides = [1, 1]} : vector<8x128xf32> to vector<8x32xf32>
    %2 = vector.extract_strided_slice %0 {offsets = [0, 32], sizes = [8, 8], strides = [1, 1]} : vector<8x128xf32> to vector<8x8xf32>
    %3 = vector.extract_strided_slice %0 {offsets = [0, 40], sizes = [8, 16], strides = [1, 1]} : vector<8x128xf32> to vector<8x16xf32>
    %c0_1 = arith.constant 0 : index
    %c0_2 = arith.constant 0 : index
    %4 = vector.load %arg2[%c0_1, %c0_2] : memref<128x32xf32, #tpu.memory_space<vmem>>, vector<32x32xf32>
    %c32 = arith.constant 32 : index
    %c0_3 = arith.constant 0 : index
    %5 = vector.load %arg2[%c32, %c0_3] : memref<128x32xf32, #tpu.memory_space<vmem>>, vector<32x32xf32>
    %c64 = arith.constant 64 : index
    %c0_4 = arith.constant 0 : index
    %6 = vector.load %arg2[%c64, %c0_4] : memref<128x32xf32, #tpu.memory_space<vmem>>, vector<16x32xf32>
    %c80 = arith.constant 80 : index
    %c0_5 = arith.constant 0 : index
    %7 = vector.load %arg2[%c80, %c0_5] : memref<128x32xf32, #tpu.memory_space<vmem>>, vector<8x32xf32>
    %c88 = arith.constant 88 : index
    %c0_6 = arith.constant 0 : index
    %8 = vector.load %arg2[%c88, %c0_6] : memref<128x32xf32, #tpu.memory_space<vmem>>, vector<32x32xf32>
    %c120 = arith.constant 120 : index
    %c0_7 = arith.constant 0 : index
    %9 = vector.load %arg2[%c120, %c0_7] : memref<128x32xf32, #tpu.memory_space<vmem>>, vector<4x32xf32>
    %10 = vector.extract_strided_slice %9 {offsets = [0, 0], sizes = [1, 32], strides = [1, 1]} : vector<4x32xf32> to vector<1x32xf32>
    %11 = vector.extract_strided_slice %9 {offsets = [1, 0], sizes = [1, 32], strides = [1, 1]} : vector<4x32xf32> to vector<1x32xf32>
    %12 = vector.extract_strided_slice %9 {offsets = [2, 0], sizes = [1, 32], strides = [1, 1]} : vector<4x32xf32> to vector<1x32xf32>
    %13 = vector.extract_strided_slice %9 {offsets = [3, 0], sizes = [1, 32], strides = [1, 1]} : vector<4x32xf32> to vector<1x32xf32>
    %cst = arith.constant dense<0.000000e+00> : vector<8x32xf32>
    %14 = tpu.matmul %1, %4, %cst {dimension_numbers = #tpu.dot_dimension_numbers<[1], [0], [0], [1], [0, 0, 1, 1], [], []>} : vector<8x32xf32>, vector<32x32xf32>, vector<8x32xf32> -> vector<8x32xf32>
    %15 = vector.broadcast %10 : vector<1x32xf32> to vector<8x32xf32>
    %16 = arith.addf %14, %15 : vector<8x32xf32>
    %17 = math.tanh %16 : vector<8x32xf32>
    %cst_8 = arith.constant dense<0.000000e+00> : vector<8x32xf32>
    %18 = tpu.matmul %17, %5, %cst_8 {dimension_numbers = #tpu.dot_dimension_numbers<[1], [0], [0], [1], [0, 0, 1, 1], [], []>} : vector<8x32xf32>, vector<32x32xf32>, vector<8x32xf32> -> vector<8x32xf32>
    %19 = vector.broadcast %11 : vector<1x32xf32> to vector<8x32xf32>
    %20 = arith.addf %18, %19 : vector<8x32xf32>
    %21 = vector.extract_strided_slice %20 {offsets = [0, 0], sizes = [8, 16], strides = [1, 1]} : vector<8x32xf32> to vector<8x16xf32>
    %22 = vector.extract_strided_slice %20 {offsets = [0, 16], sizes = [8, 16], strides = [1, 1]} : vector<8x32xf32> to vector<8x16xf32>
    %cst_9 = arith.constant 5.000000e-01 : f32
    %23 = vector.broadcast %cst_9 : f32 to vector<8x16xf32>
    %24 = arith.mulf %23, %22 : vector<8x16xf32>
    %25 = math.exp %24 : vector<8x16xf32>
    %26 = arith.mulf %25, %3 : vector<8x16xf32>
    %27 = arith.addf %21, %26 : vector<8x16xf32>
    %cst_10 = arith.constant dense<0.000000e+00> : vector<8x32xf32>
    %28 = tpu.matmul %27, %6, %cst_10 {dimension_numbers = #tpu.dot_dimension_numbers<[1], [0], [0], [1], [0, 0, 1, 1], [], []>} : vector<8x16xf32>, vector<16x32xf32>, vector<8x32xf32> -> vector<8x32xf32>
    %cst_11 = arith.constant dense<0.000000e+00> : vector<8x32xf32>
    %29 = tpu.matmul %2, %7, %cst_11 {dimension_numbers = #tpu.dot_dimension_numbers<[1], [0], [0], [1], [0, 0, 1, 1], [], []>} : vector<8x8xf32>, vector<8x32xf32>, vector<8x32xf32> -> vector<8x32xf32>
    %30 = arith.addf %28, %29 : vector<8x32xf32>
    %31 = vector.broadcast %12 : vector<1x32xf32> to vector<8x32xf32>
    %32 = arith.addf %30, %31 : vector<8x32xf32>
    %33 = math.tanh %32 : vector<8x32xf32>
    %cst_12 = arith.constant dense<0.000000e+00> : vector<8x32xf32>
    %34 = tpu.matmul %33, %8, %cst_12 {dimension_numbers = #tpu.dot_dimension_numbers<[1], [0], [0], [1], [0, 0, 1, 1], [], []>} : vector<8x32xf32>, vector<32x32xf32>, vector<8x32xf32> -> vector<8x32xf32>
    %35 = vector.broadcast %13 : vector<1x32xf32> to vector<8x32xf32>
    %36 = arith.addf %34, %35 : vector<8x32xf32>
    %cst_13 = arith.constant 0.000000e+00 : f32
    %37 = vector.broadcast %cst_13 : f32 to vector<8x48xf32>
    %38 = tpu.concatenate %20, %27, %36, %37 in 1 : vector<8x32xf32>, vector<8x16xf32>, vector<8x32xf32>, vector<8x48xf32> -> vector<8x128xf32>
    %c0_14 = arith.constant 0 : index
    %c0_15 = arith.constant 0 : index
    %39 = vector.load %arg3[%c0_14, %c0_15] : memref<8x128xf32, #tpu.memory_space<vmem>>, vector<8x128xf32>
    tpu.vector_store %arg3[%c0_14, %c0_15], %38 {strides = array<i32>} : memref<8x128xf32, #tpu.memory_space<vmem>>, vector<8x128xf32>,
    return
  }
  func.func @transform_0(%arg0: i32) -> (i32, i32) {
    %c0_i32 = arith.constant 0 : i32
    %c0_i32_0 = arith.constant 0 : i32
    return %arg0, %c0_i32 : i32, i32
  }
  func.func @transform_1(%arg0: i32) -> (i32, i32) {
    %c0_i32 = arith.constant 0 : i32
    %c0_i32_0 = arith.constant 0 : i32
    %c0_i32_1 = arith.constant 0 : i32
    return %c0_i32, %c0_i32_0 : i32, i32
  }
  func.func @transform_2(%arg0: i32) -> (i32, i32) {
    %c0_i32 = arith.constant 0 : i32
    %c0_i32_0 = arith.constant 0 : i32
    return %arg0, %c0_i32 : i32, i32
  }
}

</mosaic_0001>

<bundles_post_ra>
// kernel: tpu_custom_call.1
= control target key start
LH: loop header
LB: loop body
LE: loop exit
PB: predicated region body
PF: predicated region fallthrough
CT: control target
= control target key end

     0   :  { %v562_v1 = vmov 0.0   ;;  %vm563_vm0 = vmmov 0   ;;  %s680_s0 = inlined_call_operand.vmem [shape: f32[8,128], index: 0, kind: input, shape index: {}]   ;;  %s681_s1 = inlined_call_operand.vmem [shape: f32[128,32], index: 1, kind: input, shape index: {}]   ;;  %s682_s2 = inlined_call_operand.hbm [shape: f32[8,128], index: 2, kind: output, shape index: {}]  }
   0x1   :  { %v16_v0 = vld [vmem:[%s681_s1 + $0x18] sm:$0xff]  ;;  %481 = vmatprep.subr.mxu0 %v562_v1  ;;  %v15_v2 = vld [vmem:[%s681_s1 + $0x10] sm:$0xff]  ;;  %489 = vmatprep.mubr.msk.f32.mxu0 %vm563_vm0, %v562_v1 }
   0x2   :  { %482 = vmatpush3.msra.mxu0 %v16_v0  ;;  %492 = vmatprep.subr.mxu1 %v562_v1 }
   0x3   :  { %7 = vsyncpa [#allocation3], 0  ;;  %483 = vmatprep.subr.mxu0 %v562_v1  ;;  %v14_v3 = vld [vmem:[%s681_s1 + $0x8] sm:$0xff]  ;;  %500 = vmatprep.mubr.msk.f32.mxu1 %vm563_vm0, %v562_v1  ;;  %v13_v4 = vld [vmem:[%s681_s1] sm:$0xff]  ;;  %vm33_vm1 = vcmask 261120   ;;  %s564_s26 = smov 104   ;;  %v29_v10 = vlaneseq }
   0x4   :  { %484 = vmatpush3.msra.mxu0 %v15_v2  ;;  %v12_v5 = vld [vmem:[%s680_s0] sm:$0xff]  ;;  %v20_v6 = vld [vmem:[%s681_s1 + $0x38] sm:$0xff]  ;;  %v19_v7 = vld [vmem:[%s681_s1 + $0x30] sm:$0xff]  ;;  %s565_s29 = smov 96   ;;  %vm199_vm2 = vcmask 64512   ;;  %s566_s8 = smov 112  }
   0x5   :  { %485 = vmatprep.subr.mxu0 %v562_v1  ;;  %493 = vmatpush3.msra.mxu1 %v20_v6  ;;  %v18_v8 = vld [vmem:[%s681_s1 + $0x28] sm:$0xff]  ;;  %v17_v9 = vld [vmem:[%s681_s1 + $0x20] sm:$0xff]  ;;  %v629_v11 = vshrl.u32 %v29_v10, 7  ;;  %v635_v13 = vld [vmem:[%s681_s1 + $0x78] sm:$0xf]  ;;  %vm272_vm3 = vcmask 130048  }
   0x6   :  { %486 = vmatpush3.msra.mxu0 %v14_v3  ;;  %494 = vmatprep.subr.mxu1 %v562_v1  ;;  %v23_v19 = vld [vmem:[%s681_s1 + $0x50] sm:$0xff]  ;;  %v22_v22 = vld [vmem:[%s681_s1 + $0x48] sm:$0xff]  ;;  %v21_v30 = vld [vmem:[%s681_s1 + $0x40] sm:$0xff]  ;;  %s567_s9 = smov 32   ;;  %vm437_vm4 = vcmask 392192   ;;  %s569_s18 = smov [#allocation2]  }
   0x7   :  { %487 = vmatprep.subr.mxu0 %v562_v1  ;;  %495 = vmatpush3.msra.mxu1 %v19_v7  ;;  %v31_v12 = vsub.s32 0, %v629_v11  ;;  %v110_v21 = vsub.s32 1, %v629_v11  ;;  %v27_v37 = vld [vmem:[%s681_s1 + $0x70] sm:$0xff]  ;;  %v26_v38 = vld [vmem:[%s681_s1 + $0x68] sm:$0xff]  ;;  %v25_v39 = vld [vmem:[%s681_s1 + $0x60] sm:$0xff]  ;;  %v348_v41 = vsub.s32 2, %v629_v11 }
   0x8   :  { %488 = vmatpush3.msra.mxu0 %v13_v4  ;;  %496 = vmatprep.subr.mxu1 %v562_v1  ;;  %v24_v40 = vld [vmem:[%s681_s1 + $0x58] sm:$0xff]  ;;  %v354_v48 = vsub.s32 3, %v629_v11  ;;  %s568_s1 = smov 48   ;;  %s448_s19 = sshll.u32 %s569_s18, 4  ;;  %vm439_vm5 = vcmask 654336   ;;  %s449_s19 = int_to_ptr.vmem [resolvable:$true] %s448_s19 }
   0x9   :  { %490 = vmatmul.mubr.msk.f32.vlgmr.msra.gmra.mxu0 %vm33_vm1, %v12_v5  ;;  %515 = vmatprep.subr.mxu0 %v562_v1  ;;  %v32_v14 = vrot.slane %v635_v13, %v31_v12  ;;  %v111_v24 = vrot.slane %v635_v13, %v110_v21  ;;  %v349_v42 = vrot.slane %v635_v13, %v348_v41  ;;  %s540_s20 = scalar_lea.vmem %s449_s19, 128  ;;  %p545_p1 = scmp.lt.s32.totalorder %s449_s19, %s449_s19 }
   0xa   :  { %523 = vmatprep.mubr.msk.f32.mxu0 %vm563_vm0, %v562_v1  ;;  %497 = vmatpush3.msra.mxu1 %v18_v8  ;;  %v355_v49 = vrot.slane %v635_v13, %v354_v48  ;;  %p541_p0 = scmp.ne.s32.totalorder %s449_s19, %s540_s20  ;;  %p546_p2 = scmp.lt.s32.totalorder %s540_s20, %s540_s20 }
   0xb   :  { %498 = vmatprep.subr.mxu1 %v562_v1  ;;  %188 = vrot.lane.b32.xlu0 %v12_v5, %s564_s26 }
   0xc   :  { %499 = vmatpush3.msra.mxu1 %v17_v9  ;;  %516 = vmatpush3.msra.mxu0 %v27_v37  ;;  %p547_p3 = por %p546_p2, %p545_p1 }
   0xd   :  { %503 = vmatprep.subr.mxu1 %v562_v1  ;;  %517 = vmatprep.subr.mxu0 %v562_v1 }
   0xe   :  { %518 = vmatpush3.msra.mxu0 %v26_v38  ;;  %p548_p4 = pnand %p547_p3, %p541_p0 }
   0xf   :  { %197 = vrot.lane.b32.xlu0 %v12_v5, %s565_s29  ;;  %519 = vmatprep.subr.mxu0 %v562_v1 }
  0x10   :  { %520 = vmatpush3.msra.mxu0 %v25_v39 }
  0x11   :  { %521 = vmatprep.subr.mxu0 %v562_v1 }
  0x12   :  { %522 = vmatpush3.msra.mxu0 %v24_v40 }
  0x7d   :  { %v189_v20 = vpop.permute.xlu0 %188 }
  0x81   :  { %v198_v23 = vpop.permute.xlu0 %197 }
  0xc9   :  { %v103_v15 = vpop.f32.mrf.mxu0 }
  0xca   :  { %v104_v16 = vadd.f32 %v103_v15, %v32_v14 }
  0xcb   :  { %v491_v17 = vpop.f32.mrf.mxu0 }
  0xcc   :  { %534 = vtanh.f32 %v104_v16 }
  0xd9   :  { %v535_v18 = vpop.eup %534 }
  0xda   :  { %501 = vmatmul.mubr.msk.f32.vlgmr.msra.gmra.mxu1 %vm33_vm1, %v535_v18 }
  0xdb   :  { %505 = vmatprep.mubr.msk.f32.mxu1 %vm563_vm0, %v562_v1  ;;  %504 = vmatpush3.msra.mxu1 %v23_v19 }
  0xdc   :  { %508 = vmatprep.subr.mxu1 %v562_v1 }
  0xde   :  { %506 = vmatmul.mubr.msk.f32.vlgmr.msra.gmra.mxu1 %vm199_vm2, %v198_v23 }
  0xdf   :  { %509 = vmatpush3.msra.mxu1 %v22_v22  ;;  %512 = vmatprep.mubr.msk.f32.mxu1 %vm563_vm0, %v562_v1 }
  0xe0   :  { %510 = vmatprep.subr.mxu1 %v562_v1 }
  0xe1   :  { %511 = vmatpush3.msra.mxu1 %v21_v30 }
 0x19a   :  { %v181_v25 = vpop.f32.mrf.mxu1 }
 0x19b   :  { %v182_v26 = vadd.f32 %v181_v25, %v111_v24 }
 0x19c   :  { %v502_v27 = vpop.f32.mrf.mxu1 }
 0x19d   :  { %v185_v28 = vmul.f32 0.5, %v182_v26 }
 0x19e   :  { %v268_v35 = vpop.f32.mrf.mxu1 }
 0x19f   :  { %v186_v29 = vmul.f32 1.442695, %v185_v28 }
 0x1a0   :  { %v507_v36 = vpop.f32.mrf.mxu1 }
 0x1a1   :  { %536 = vpow2.f32 %v186_v29 }
 0x1ae   :  { %v537_v31 = vpop.eup %536 }
 0x1af   :  { %v191_v32 = vmul.f32 %v537_v31, %v189_v20 }
 0x1b1   :  { %193 = vrot.lane.b32.xlu1 %v191_v32, %s566_s8 }
 0x223   :  { %v194_v33 = vpop.permute.xlu1 %193 }
 0x224   :  { %v196_v34 = vadd.f32 %v194_v33, %v182_v26 }
 0x226   :  { %429 = vrot.lane.b32.xlu1 %v196_v34, %s567_s9  ;;  %513 = vmatmul.mubr.msk.f32.vlgmr.msra.gmra.mxu1 %vm272_vm3, %v196_v34 }
 0x298   :  { %v430_v53 = vpop.permute.xlu1 %429 }
 0x299   :  { %v436_v54 = vsel %vm33_vm1, %v182_v26, %v430_v53 }
 0x2e6   :  { %v342_v43 = vpop.f32.mrf.mxu1 }
 0x2e7   :  { %v343_v44 = vadd.f32 %v342_v43, %v268_v35 }
 0x2e8   :  { %v514_v45 = vpop.f32.mrf.mxu1 }
 0x2e9   :  { %v350_v46 = vadd.f32 %v349_v42, %v343_v44 }
 0x2eb   :  { %538 = vtanh.f32 %v350_v46 }
 0x2f8   :  { %v539_v47 = vpop.eup %538 }
 0x2f9   :  { %524 = vmatmul.mubr.msk.f32.vlgmr.msra.gmra.mxu0 %vm33_vm1, %v539_v47 }
 0x3b9   :  { %v425_v50 = vpop.f32.mrf.mxu0 }
 0x3ba   :  { %v426_v51 = vadd.f32 %v425_v50, %v355_v49 }
 0x3bb   :  { %v525_v52 = vpop.f32.mrf.mxu0 }
 0x3bc   :  { %433 = vrot.lane.b32.xlu0 %v426_v51, %s568_s1 }
 0x42e   :  { %v434_v55 = vpop.permute.xlu0 %433 }
 0x42f   :  { %v438_v56 = vsel %vm437_vm4, %v436_v54, %v434_v55 }
 0x430   :  { %v440_v57 = vsel %vm439_vm5, %v438_v56, 0.0 }
 0x431   :  { %441 = vst [vmem:[#allocation2] sm:$0xff] %v440_v57 }
 0x432   :  { %551 = shalt.err (!%p548_p4)
}
 0x433   :  { %451 = dma.vmem_to_hbm [thread:$0]  %s449_s19, 128, %s682_s2, [#allocation3]  }
 0x434   :  { %560 = dma.done.wait [#allocation3], 128  }
 0x435   :  { %561 = vsyncadd [#allocation3], 4294967168 }
 0x436   :  { %455 = vsyncpa [#allocation3], 1 }

</bundles_post_ra>
